<compile_context>
chip_gen: v5e
topology: v5e:2x2
jax: 0.10.0
libtpu: 0.0.40
codegen_flags: <defaults>
</compile_context>

<pallas_src>
import functools

import jax
import jax.numpy as jnp
from jax.experimental import pallas as pl
from jax.experimental.pallas import tpu as pltpu

_LANE = 128
_MAX_TILE_ROWS = 2048  # (2048, 128) f32 tile = 1 MiB per buffer


def _law_kernel(col_ref, w_ref, gated_ref, gate_ref, *, threshold, direction):
    # col_ref: (TR, 128) lane-dense tile of the selected column; w_ref: (1,) in SMEM.
    val = col_ref[...]
    if direction == "less":
        z = 10.0 * (threshold - val)
    else:
        # "greater" and "equals" share the same formula in the PyTorch spec.
        z = 10.0 * (val - threshold)
    gate = jax.nn.sigmoid(z)  # elementwise; exp/recip go to the EUP, free under DMA
    gate_ref[...] = gate
    gated_ref[...] = w_ref[0] * gate


def law_module_forward(x, weight, *, index, threshold, direction="greater"):
    """x: (B, F) float; weight: scalar parameter. Returns (weight*gate, gate), each (B,)."""
    if direction not in ("greater", "less", "equals"):
        raise ValueError("Unknown direction")

    B = x.shape[0]
    w = jnp.asarray(weight, dtype=jnp.float32).reshape((1,))

    # Slice only the needed column in the wrapper (XLA fuses this); the kernel
    # never sees the full [B, F] array.
    col = x[:, index].astype(jnp.float32)  # (B,)

    # Lay the column out as (rows, 128) lanes, padded so every block is legal.
    rows = max(pl.cdiv(B, _LANE), 1)
    if rows <= _MAX_TILE_ROWS:
        tile_rows = rows                       # single grid step, full-array block
        rows_pad = rows
    else:
        tile_rows = _MAX_TILE_ROWS             # multiple of 8 -> (8,128)-aligned
        rows_pad = pl.cdiv(rows, tile_rows) * tile_rows
    b_pad = rows_pad * _LANE
    col2d = jnp.pad(col, (0, b_pad - B)).reshape(rows_pad, _LANE)

    kernel = functools.partial(
        _law_kernel, threshold=float(threshold), direction=direction
    )

    grid = (rows_pad // tile_rows,)
    tile_spec = pl.BlockSpec((tile_rows, _LANE), lambda i: (i, 0))

    gated2d, gate2d = pl.pallas_call(
        kernel,
        out_shape=(
            jax.ShapeDtypeStruct((rows_pad, _LANE), jnp.float32),
            jax.ShapeDtypeStruct((rows_pad, _LANE), jnp.float32),
        ),
        grid=grid,
        in_specs=[
            tile_spec,                                   # column slab, lane-dense
            pl.BlockSpec(memory_space=pltpu.SMEM),       # scalar weight
        ],
        out_specs=(tile_spec, tile_spec),
        compiler_params=pltpu.CompilerParams(
            dimension_semantics=("parallel",),
        ),
    )(col2d, w)

    gated = gated2d.reshape(-1)[:B]
    gate = gate2d.reshape(-1)[:B]
    return gated, gate


def _reference(x, weight, *, index, threshold, direction="greater"):
    val = x[:, index]
    if direction == "less":
        gate = jax.nn.sigmoid(10.0 * (threshold - val))
    else:
        gate = jax.nn.sigmoid(10.0 * (val - threshold))
    return weight * gate, gate


if __name__ == "__main__":
    key = jax.random.PRNGKey(0)
    B, F = 8, 16
    x = jax.random.normal(key, (B, F), dtype=jnp.float32)

    # Deterministic parameter init matching nn.Parameter(torch.tensor(1.0)).
    weight = jnp.float32(1.0)
    index = 3
    threshold = 0.25
    direction = "greater"

    gated, gate = law_module_forward(
        x, weight, index=index, threshold=threshold, direction=direction
    )
    jax.block_until_ready((gated, gate))

    ref_gated, ref_gate = _reference(
        x, weight, index=index, threshold=threshold, direction=direction
    )
    assert gated.shape == (B,) and gate.shape == (B,)
    assert jnp.allclose(gated, ref_gated, atol=1e-5), "gated mismatch"
    assert jnp.allclose(gate, ref_gate, atol=1e-5), "gate mismatch"

    # Also exercise the "less" branch and a larger, multi-tile batch.
    B2 = 3000
    x2 = jax.random.normal(jax.random.PRNGKey(1), (B2, F), dtype=jnp.float32)
    g2, gt2 = law_module_forward(
        x2, weight, index=5, threshold=-0.1, direction="less"
    )
    jax.block_until_ready((g2, gt2))
    r2, rt2 = _reference(x2, weight, index=5, threshold=-0.1, direction="less")
    assert jnp.allclose(g2, r2, atol=1e-5) and jnp.allclose(gt2, rt2, atol=1e-5)

    print("KERNEL_OK")
</pallas_src>

<mosaic_0001>
module attributes {stable_mosaic.version = 11 : i64} {
  func.func @_law_kernel(%arg0: i32, %arg1: memref<1x128xf32, #tpu.memory_space<vmem>>, %arg2: memref<1xf32, #tpu.memory_space<smem>>, %arg3: memref<1x128xf32, #tpu.memory_space<vmem>>, %arg4: memref<1x128xf32, #tpu.memory_space<vmem>>) attributes {dimension_semantics = [#tpu.dimension_semantics<parallel>], iteration_bounds = array<i64: 1>, scalar_prefetch = 0 : i64, scratch_operands = 0 : i64, tpu.core_type = #tpu.core_type<tc>, window_params = [{transform_indices = @transform_0, window_bounds = array<i64: 1, 128>}, {transform_indices = @transform_1, window_bounds = array<i64: 1>}, {transform_indices = @transform_2, window_bounds = array<i64: 1, 128>}, {transform_indices = @transform_3, window_bounds = array<i64: 1, 128>}]} {
    %c0 = arith.constant 0 : index
    %c0_0 = arith.constant 0 : index
    %0 = vector.load %arg1[%c0, %c0_0] : memref<1x128xf32, #tpu.memory_space<vmem>>, vector<1x128xf32>
    %cst = arith.constant 2.500000e-01 : f32
    %1 = vector.broadcast %cst : f32 to vector<1x128xf32>
    %2 = arith.subf %0, %1 : vector<1x128xf32>
    %cst_1 = arith.constant 1.000000e+01 : f32
    %3 = vector.broadcast %cst_1 : f32 to vector<1x128xf32>
    %4 = arith.mulf %3, %2 : vector<1x128xf32>
    %5 = arith.negf %4 : vector<1x128xf32>
    %6 = math.exp %5 : vector<1x128xf32>
    %cst_2 = arith.constant 1.000000e+00 : f32
    %7 = vector.broadcast %cst_2 : f32 to vector<1x128xf32>
    %8 = arith.addf %7, %6 : vector<1x128xf32>
    %9 = arith.divf %7, %8 : vector<1x128xf32>
    %c0_3 = arith.constant 0 : index
    %c0_4 = arith.constant 0 : index
    %10 = vector.load %arg4[%c0_3, %c0_4] : memref<1x128xf32, #tpu.memory_space<vmem>>, vector<1x128xf32>
    tpu.vector_store %arg4[%c0_3, %c0_4], %9 {strides = array<i32>} : memref<1x128xf32, #tpu.memory_space<vmem>>, vector<1x128xf32>,
    %c0_5 = arith.constant 0 : index
    %11 = memref.load %arg2[%c0_5] : memref<1xf32, #tpu.memory_space<smem>>
    %12 = vector.broadcast %11 : f32 to vector<1x128xf32>
    %13 = arith.mulf %12, %9 : vector<1x128xf32>
    %c0_6 = arith.constant 0 : index
    %c0_7 = arith.constant 0 : index
    %14 = vector.load %arg3[%c0_6, %c0_7] : memref<1x128xf32, #tpu.memory_space<vmem>>, vector<1x128xf32>
    tpu.vector_store %arg3[%c0_6, %c0_7], %13 {strides = array<i32>} : memref<1x128xf32, #tpu.memory_space<vmem>>, vector<1x128xf32>,
    return
  }
  func.func @transform_0(%arg0: i32) -> (i32, i32) {
    %c0_i32 = arith.constant 0 : i32
    %c0_i32_0 = arith.constant 0 : i32
    return %arg0, %c0_i32 : i32, i32
  }
  func.func @transform_1(%arg0: i32) -> i32 {
    %c0_i32 = arith.constant 0 : i32
    %c0_i32_0 = arith.constant 0 : i32
    return %c0_i32 : i32
  }
  func.func @transform_2(%arg0: i32) -> (i32, i32) {
    %c0_i32 = arith.constant 0 : i32
    %c0_i32_0 = arith.constant 0 : i32
    return %arg0, %c0_i32 : i32, i32
  }
  func.func @transform_3(%arg0: i32) -> (i32, i32) {
    %c0_i32 = arith.constant 0 : i32
    %c0_i32_0 = arith.constant 0 : i32
    return %arg0, %c0_i32 : i32, i32
  }
}

</mosaic_0001>

<bundles_post_ra>
// kernel: tpu_custom_call.1
= control target key start
LH: loop header
LB: loop body
LE: loop exit
PB: predicated region body
PF: predicated region fallthrough
CT: control target
= control target key end

     0   :  { %10 = vsyncpa [#allocation4], 0  ;;  %s169_s0 = inlined_call_operand.vmem [shape: f32[1,128], index: 0, kind: input, shape index: {}]   ;;  %s170_s1 = inlined_call_operand.<no memory space> [shape: f32[1], index: 1, kind: input, shape index: {}]   ;;  %s171_s2 = inlined_call_operand.hbm [shape: f32[1,128], index: 2, kind: output, shape index: {0}]   ;;  %s172_s3 = inlined_call_operand.hbm [shape: f32[1,128], index: 3, kind: output, shape index: {1}]  }
   0x1   :  { %v16_v0 = vld [vmem:[%s169_s0] sm:$0x1] }
   0x2   :  { %11 = vsyncpa [#allocation6], 0  ;;  %v75_v1 = vadd.f32 -0.25, %v16_v0  ;;  %s135_s14 = smov [#allocation5]   ;;  %s61_s17 = sshll.u32 %s172_s3, 4  ;;  %v40_v14 = vstv %s170_s1  ;;  %s62_s17 = int_to_ptr.hbm [resolvable:$true] %s61_s17 }
   0x3   :  { %s59_s0 = sshll.u32 %s135_s14, 4  ;;  %s136_s20 = smov [#allocation3]   ;;  %s60_s0 = int_to_ptr.vmem [resolvable:$true] %s59_s0 }
   0x4   :  { %v76_v2 = vmul.f32 -10.0, %v75_v1  ;;  %s48_s21 = sshll.u32 %s136_s20, 4  ;;  %s50_s24 = sshll.u32 %s171_s2, 4  ;;  %s49_s21 = int_to_ptr.vmem [resolvable:$true] %s48_s21  ;;  %s51_s24 = int_to_ptr.hbm [resolvable:$true] %s50_s24 }
   0x6   :  { %v20_v3 = vmul.f32 1.442695, %v76_v2 }
   0x8   :  { %79 = vpow2.f32 %v20_v3 }
   0xe   :  { %v80_v4 = vpop.eup %79 }
   0xf   :  { %v22_v5 = vadd.f32 1.0, %v80_v4 }
  0x11   :  { %81 = vrcp.f32 %v22_v5  ;;  %v34_v8 = vand.u32 2147483648, %v22_v5  ;;  %vm28_vm0 = vweird.f32 %v22_v5  ;;  %v32_v10 = vand.u32 2147483647, %v22_v5 }
  0x13   :  { %v35_v12 = vor.u32 1.1754944e-38, %v34_v8  ;;  %vm33_vm3 = vcmp.eq.f32.partialorder %v32_v10, 8.507059e+37 }
  0x17   :  { %v82_v6 = vpop.eup %81 }
  0x18   :  { %v24_v7 = vmul.f32 %v82_v6, %v22_v5  ;;  %vm29_vm1 = vweird.f32 %v82_v6 }
  0x19   :  { %vm30_vm2 = vmor %vm28_vm0, %vm29_vm1 }
  0x1a   :  { %v25_v9 = vsub.f32 1.0, %v24_v7 }
  0x1c   :  { %v26_v11 = vmul.f32 %v82_v6, %v25_v9 }
  0x1e   :  { %v27_v13 = vadd.f32 %v82_v6, %v26_v11 }
  0x20   :  { %v31_v15 = vsel %vm30_vm2, %v82_v6, %v27_v13 }
  0x21   :  { %v36_v16 = vsel %vm33_vm3, %v35_v12, %v31_v15 }
  0x22   :  { %38 = vst [vmem:[#allocation5] sm:$0x1] %v36_v16  ;;  %v41_v17 = vmul.f32 %v40_v14, %v36_v16 }
  0x23   :  { %64 = dma.vmem_to_hbm [thread:$0]  %s60_s0, 16, %s62_s17, [#allocation6]  }
  0x24   :  { %42 = vst [vmem:[#allocation3] sm:$0x1] %v41_v17 }
  0x25   :  { %53 = dma.vmem_to_hbm [thread:$0]  %s49_s21, 16, %s51_s24, [#allocation4]  }
  0x26   :  { %131 = dma.done.wait [#allocation4], 16  }
  0x27   :  { %132 = vsyncadd [#allocation4], 4294967280 }
  0x28   :  { %133 = dma.done.wait [#allocation6], 16  }
  0x29   :  { %134 = vsyncadd [#allocation6], 4294967280 }
  0x2a   :  { %73 = vsyncpa [#allocation4], 1 }
  0x2b   :  { %74 = vsyncpa [#allocation6], 1 }

</bundles_post_ra>
